<compile_context>
chip_gen: v7x
topology: tpu7x:2x2x1
jax: 0.10.0
libtpu: 0.0.40
codegen_flags: <defaults>
</compile_context>

<pallas_src>
import math

import jax
import jax.numpy as jnp
from jax.experimental import pallas as pl
from jax.experimental.pallas import tpu as pltpu


def _template_kernel(s_ref, x1_ref, x2_ref, o1_ref, o3_ref):
    # TODO(synk): `_C.torch_ops_template` semantics are opaque (template stub);
    # this kernel implements the elementwise template hot path only.
    a1 = s_ref[0]        # args_1
    a2 = s_ref[1]        # args_2
    scale = s_ref[2]     # trainable_param[0]
    shift = s_ref[3]     # trainable_param[1]
    ibuf = s_ref[4]      # buffer_param[0], pre-cast to f32 in the wrapper

    x1 = x1_ref[...].astype(jnp.float32)
    x2 = x2_ref[...].astype(jnp.float32)

    # output_1: args_1-scaled input_1 plus trainable/buffer contributions.
    o1_ref[...] = (a1 * x1 + scale * x2 + ibuf).astype(o1_ref.dtype)
    # output_3: args_2-scaled input_2 plus trainable shift.
    o3_ref[...] = (a2 * x2 + shift).astype(o3_ref.dtype)


def _round_up(x, m):
    return (x + m - 1) // m * m


def _pick_lane(total, lane_max):
    """Largest multiple of 128 (<= lane_max) that divides `total`, else None."""
    lane = (min(lane_max, total) // 128) * 128
    while lane >= 128:
        if total % lane == 0:
            return lane
        lane -= 128
    return None


def torch_ops_template_forward(input_1, input_2, buffer_param, trainable_param,
                               args_1, args_2, *,
                               lane_max=1024, max_row_tile=1024,
                               small_bytes=1 << 20, force_pallas=False):
    """Pallas forward pass.  Returns (output_1, output_3) with input dtype/shape."""
    if input_1.shape != input_2.shape:
        raise ValueError("input_1 and input_2 must have the same shape")
    if trainable_param.size < 2:
        raise ValueError("trainable_param must have at least 2 elements")
    if buffer_param.size < 1:
        raise ValueError("buffer_param must have at least 1 element")

    shape = input_1.shape
    total = math.prod(shape)
    in_dtype = jnp.dtype(input_1.dtype)
    out_dtype = in_dtype if jnp.issubdtype(in_dtype, jnp.floating) else jnp.dtype(jnp.float32)

    tp = trainable_param.astype(jnp.float32).reshape(-1)
    bp = buffer_param.astype(jnp.float32).reshape(-1)
    a1 = jnp.asarray(args_1, jnp.float32)
    a2 = jnp.asarray(args_2, jnp.float32)

    # Small-input fast path: fixed pallas_call launch overhead dominates below ~1 MiB.
    if (not force_pallas) and total * in_dtype.itemsize < small_bytes:
        x1 = input_1.astype(jnp.float32)
        x2 = input_2.astype(jnp.float32)
        o1 = (a1 * x1 + tp[0] * x2 + bp[0]).astype(out_dtype)
        o3 = (a2 * x2 + tp[1]).astype(out_dtype)
        return o1, o3

    # All runtime scalars through one small SMEM f32 array (no recompiles when
    # args_1/args_2 change; int->f32 cast hoisted out of the kernel).
    scalars = jnp.stack([a1, a2, tp[0], tp[1], bp[0]])

    # Lane-dense slab: prefer a lane that divides `total` exactly -> no pad, no
    # slice-back copies.  Fallback: pad to a multiple of 128.
    lane = _pick_lane(total, lane_max)
    if lane is None:
        lane = min(lane_max, _round_up(total, 128))
        padded_total = _round_up(total, lane)
    else:
        padded_total = total
    pad = padded_total - total
    rows = padded_total // lane

    # Packed-layout sublane multiple: 8 for 32-bit, 16 for 16-bit, 32 for 8-bit.
    row_align = 8 * max(1, 4 // in_dtype.itemsize)
    if rows <= row_align:
        row_tile = rows                               # block == full array dim
    else:
        # Target >= 4 grid steps (keeps both v7x TensorCores busy) but cap the
        # tile at max_row_tile rows to stay well within VMEM on every chip.
        target = _round_up(pl.cdiv(rows, 4), row_align)
        row_tile = min(max_row_tile, max(row_align, target))
    grid = pl.cdiv(rows, row_tile)                    # ragged last block is masked by Pallas

    flat1 = input_1.reshape(-1)
    flat2 = input_2.reshape(-1)
    if pad:
        flat1 = jnp.pad(flat1, (0, pad))
        flat2 = jnp.pad(flat2, (0, pad))
    x1 = flat1.reshape(rows, lane)
    x2 = flat2.reshape(rows, lane)

    in_bytes = 2 * total * in_dtype.itemsize
    out_bytes = 2 * total * out_dtype.itemsize
    cost = pl.CostEstimate(flops=5 * total,
                           transcendentals=0,
                           bytes_accessed=in_bytes + out_bytes)

    o1, o3 = pl.pallas_call(
        _template_kernel,
        out_shape=(jax.ShapeDtypeStruct((rows, lane), out_dtype),
                   jax.ShapeDtypeStruct((rows, lane), out_dtype)),
        grid_spec=pltpu.PrefetchScalarGridSpec(
            num_scalar_prefetch=0,
            grid=(grid,),
            in_specs=[
                # scalar params live untiled in SMEM
                pl.BlockSpec(memory_space=pltpu.MemorySpace.SMEM),
                # inputs tiled along the fused row dimension, lane-dense
                pl.BlockSpec((row_tile, lane), lambda i: (i, 0)),
                pl.BlockSpec((row_tile, lane), lambda i: (i, 0)),
            ],
            out_specs=[
                pl.BlockSpec((row_tile, lane), lambda i: (i, 0)),
                pl.BlockSpec((row_tile, lane), lambda i: (i, 0)),
            ],
        ),
        compiler_params=pltpu.CompilerParams(
            dimension_semantics=("parallel",),
            vmem_limit_bytes=48 * 1024 * 1024),
        cost_estimate=cost,
    )(scalars, x1, x2)

    if pad:
        o1 = o1.reshape(-1)[:total]
        o3 = o3.reshape(-1)[:total]
    return o1.reshape(shape), o3.reshape(shape)


class TorchOpsTemplate:
    """JAX mirror of the PyTorch nn.Module (forward only)."""

    def __init__(self, args_1, args_2):
        self.args_1 = args_1
        self.args_2 = args_2
        # deterministic init, exactly as in the PyTorch __init__
        self.buffer_param = jnp.array([0, 0], dtype=jnp.int32)
        self.trainable_param = jnp.array([0.0, 0.0], dtype=jnp.float32)

    def __call__(self, input_1, input_2, *, force_pallas=False):
        return torch_ops_template_forward(
            input_1, input_2, self.buffer_param, self.trainable_param,
            self.args_1, self.args_2, force_pallas=force_pallas)


if __name__ == "__main__":
    key = jax.random.PRNGKey(0)
    k1, k2 = jax.random.split(key)

    # small NCHW inputs: batch=2, channels=4, spatial=16x16
    input_1 = jax.random.normal(k1, (2, 4, 16, 16), dtype=jnp.float32)
    input_2 = jax.random.normal(k2, (2, 4, 16, 16), dtype=jnp.float32)

    mod = TorchOpsTemplate(args_1=2.0, args_2=0.5)

    # Force the Pallas path so the kernel is actually exercised at demo size.
    out_1, out_3 = mod(input_1, input_2, force_pallas=True)
    jax.block_until_ready((out_1, out_3))

    # pure-JAX reference of the same template compute
    scale, shift = mod.trainable_param[0], mod.trainable_param[1]
    ibuf = mod.buffer_param[0].astype(jnp.float32)
    ref_1 = mod.args_1 * input_1 + scale * input_2 + ibuf
    ref_3 = mod.args_2 * input_2 + shift

    assert out_1.shape == input_1.shape and out_3.shape == input_2.shape
    assert out_1.dtype == input_1.dtype and out_3.dtype == input_2.dtype
    assert jnp.allclose(out_1, ref_1, atol=1e-6)
    assert jnp.allclose(out_3, ref_3, atol=1e-6)

    # Default call takes the small-input fast path; results must match too.
    fp_1, fp_3 = mod(input_1, input_2)
    jax.block_until_ready((fp_1, fp_3))
    assert jnp.allclose(fp_1, ref_1, atol=1e-6)
    assert jnp.allclose(fp_3, ref_3, atol=1e-6)

    print("KERNEL_OK")
</pallas_src>

<mosaic_0001>
module attributes {stable_mosaic.version = 11 : i64} {
  func.func @_template_kernel(%arg0: i32, %arg1: memref<5xf32, #tpu.memory_space<smem>>, %arg2: memref<2x1024xf32, #tpu.memory_space<vmem>>, %arg3: memref<2x1024xf32, #tpu.memory_space<vmem>>, %arg4: memref<2x1024xf32, #tpu.memory_space<vmem>>, %arg5: memref<2x1024xf32, #tpu.memory_space<vmem>>) attributes {dimension_semantics = [#tpu.dimension_semantics<parallel>], iteration_bounds = array<i64: 1>, scalar_prefetch = 0 : i64, scratch_operands = 0 : i64, tpu.core_type = #tpu.core_type<tc>, window_params = [{transform_indices = @transform_0, window_bounds = array<i64: 5>}, {transform_indices = @transform_1, window_bounds = array<i64: 2, 1024>}, {transform_indices = @transform_2, window_bounds = array<i64: 2, 1024>}, {transform_indices = @transform_3, window_bounds = array<i64: 2, 1024>}, {transform_indices = @transform_4, window_bounds = array<i64: 2, 1024>}]} {
    %c0 = arith.constant 0 : index
    %0 = memref.load %arg1[%c0] : memref<5xf32, #tpu.memory_space<smem>>
    %c1 = arith.constant 1 : index
    %1 = memref.load %arg1[%c1] : memref<5xf32, #tpu.memory_space<smem>>
    %c2 = arith.constant 2 : index
    %2 = memref.load %arg1[%c2] : memref<5xf32, #tpu.memory_space<smem>>
    %c3 = arith.constant 3 : index
    %3 = memref.load %arg1[%c3] : memref<5xf32, #tpu.memory_space<smem>>
    %c4 = arith.constant 4 : index
    %4 = memref.load %arg1[%c4] : memref<5xf32, #tpu.memory_space<smem>>
    %c0_0 = arith.constant 0 : index
    %c0_1 = arith.constant 0 : index
    %5 = vector.load %arg2[%c0_0, %c0_1] : memref<2x1024xf32, #tpu.memory_space<vmem>>, vector<2x1024xf32>
    %c0_2 = arith.constant 0 : index
    %c0_3 = arith.constant 0 : index
    %6 = vector.load %arg3[%c0_2, %c0_3] : memref<2x1024xf32, #tpu.memory_space<vmem>>, vector<2x1024xf32>
    %7 = vector.broadcast %0 : f32 to vector<2x1024xf32>
    %8 = arith.mulf %7, %5 : vector<2x1024xf32>
    %9 = vector.broadcast %2 : f32 to vector<2x1024xf32>
    %10 = arith.mulf %9, %6 : vector<2x1024xf32>
    %11 = arith.addf %8, %10 : vector<2x1024xf32>
    %12 = vector.broadcast %4 : f32 to vector<2x1024xf32>
    %13 = arith.addf %11, %12 : vector<2x1024xf32>
    %c0_4 = arith.constant 0 : index
    %c0_5 = arith.constant 0 : index
    %14 = vector.load %arg4[%c0_4, %c0_5] : memref<2x1024xf32, #tpu.memory_space<vmem>>, vector<2x1024xf32>
    tpu.vector_store %arg4[%c0_4, %c0_5], %13 {strides = array<i32>} : memref<2x1024xf32, #tpu.memory_space<vmem>>, vector<2x1024xf32>,
    %15 = vector.broadcast %1 : f32 to vector<2x1024xf32>
    %16 = arith.mulf %15, %6 : vector<2x1024xf32>
    %17 = vector.broadcast %3 : f32 to vector<2x1024xf32>
    %18 = arith.addf %16, %17 : vector<2x1024xf32>
    %c0_6 = arith.constant 0 : index
    %c0_7 = arith.constant 0 : index
    %19 = vector.load %arg5[%c0_6, %c0_7] : memref<2x1024xf32, #tpu.memory_space<vmem>>, vector<2x1024xf32>
    tpu.vector_store %arg5[%c0_6, %c0_7], %18 {strides = array<i32>} : memref<2x1024xf32, #tpu.memory_space<vmem>>, vector<2x1024xf32>,
    return
  }
  func.func @transform_0(%arg0: i32) -> i32 {
    %c0_i32 = arith.constant 0 : i32
    %c0_i32_0 = arith.constant 0 : i32
    return %c0_i32 : i32
  }
  func.func @transform_1(%arg0: i32) -> (i32, i32) {
    %c0_i32 = arith.constant 0 : i32
    %c0_i32_0 = arith.constant 0 : i32
    return %arg0, %c0_i32 : i32, i32
  }
  func.func @transform_2(%arg0: i32) -> (i32, i32) {
    %c0_i32 = arith.constant 0 : i32
    %c0_i32_0 = arith.constant 0 : i32
    return %arg0, %c0_i32 : i32, i32
  }
  func.func @transform_3(%arg0: i32) -> (i32, i32) {
    %c0_i32 = arith.constant 0 : i32
    %c0_i32_0 = arith.constant 0 : i32
    return %arg0, %c0_i32 : i32, i32
  }
  func.func @transform_4(%arg0: i32) -> (i32, i32) {
    %c0_i32 = arith.constant 0 : i32
    %c0_i32_0 = arith.constant 0 : i32
    return %arg0, %c0_i32 : i32, i32
  }
}

</mosaic_0001>

<bundles_post_ra>
// kernel: tpu_custom_call.1
= control target key start
LH: loop header
LB: loop body
LE: loop exit
PB: predicated region body
PF: predicated region fallthrough
CT: control target
= control target key end

     0   :  { %10 = vsyncpa [#allocation5], 0  ;;  %s328_s0 = inlined_call_operand.hbm [shape: f32[5], index: 0, kind: input, shape index: {}]   ;;  %s329_s1 = inlined_call_operand.hbm [shape: f32[2,1024], index: 1, kind: input, shape index: {}]   ;;  %s330_s2 = inlined_call_operand.hbm [shape: f32[2,1024], index: 2, kind: input, shape index: {}]   ;;  %s331_s3 = inlined_call_operand.hbm [shape: f32[2,1024], index: 3, kind: output, shape index: {0}]   ;;  %s332_s4 = inlined_call_operand.hbm [shape: f32[2,1024], index: 4, kind: output, shape index: {1}]  }
   0x1   :  { %11 = vsyncpa [#allocation3], 0 }
   0x2   :  { %12 = vsyncpa [#allocation8], 0 }
   0x3   :  { %13 = vsyncpa [#allocation4], 0 }
   0x4   :  { %14 = vsyncpa [#allocation11], 0  ;;  %s123_s17 = scalar_lea.hbm %s328_s0, 16 }
   0x5   :  { %p124_p0 = scmp.ne.s32.totalorder %s328_s0, %s123_s17  ;;  %p127_p1 = scmp.lt.u32.totalorder %s123_s17, %s328_s0 }
   0x7   :  { %p129_p2 = pnand %p127_p1, %p124_p0 }
   0x9   :  { %132 = shalt.err (!%p129_p2)
}
   0xa   :  { %s231_s22 = smov [#allocation2]   ;;  %s232_s25 = smov [#allocation6]  }
   0xb   :  { %22 = dma.hbm_to_smem %s328_s0, 16, %s231_s22, [#allocation5]  }
   0xc   :  { %s29_s26 = sshll.u32 %s232_s25, 4  ;;  %s233_s27 = smov [#allocation7]   ;;  %s30_s26 = int_to_ptr.vmem [resolvable:$true] %s29_s26 }
   0xd   :  { %s39_s28 = sshll.u32 %s233_s27, 4  ;;  %s133_s5 = scalar_lea.hbm %s329_s1, 256  ;;  %s40_s28 = int_to_ptr.vmem [resolvable:$true] %s39_s28 }
   0xe   :  { %p134_p3 = scmp.ne.s32.totalorder %s329_s1, %s133_s5  ;;  %p137_p4 = scmp.lt.u32.totalorder %s133_s5, %s329_s1 }
  0x10   :  { %p139_p5 = pnand %p137_p4, %p134_p3 }
  0x12   :  { %142 = shalt.err (!%p139_p5)
}
  0x13   :  { %s143_s0 = scalar_lea.vmem %s30_s26, 256  ;;  %p148_p7 = scmp.lt.s32.totalorder %s30_s26, %s30_s26 }
  0x14   :  { %p144_p6 = scmp.ne.s32.totalorder %s30_s26, %s143_s0  ;;  %p149_p8 = scmp.lt.s32.totalorder %s143_s0, %s143_s0 }
  0x16   :  { %p150_p9 = por %p149_p8, %p148_p7 }
  0x18   :  { %p151_p10 = pnand %p150_p9, %p144_p6 }
  0x1a   :  { %154 = shalt.err (!%p151_p10)
}
  0x1b   :  { %32 = dma.hbm_to_vmem [thread:$0]  %s329_s1, 256, %s30_s26, [#allocation3]  }
  0x1c   :  { %s155_s14 = scalar_lea.hbm %s330_s2, 256 }
  0x1d   :  { %p156_p11 = scmp.ne.s32.totalorder %s330_s2, %s155_s14  ;;  %p159_p12 = scmp.lt.u32.totalorder %s155_s14, %s330_s2 }
  0x1f   :  { %p161_p13 = pnand %p159_p12, %p156_p11 }
  0x21   :  { %164 = shalt.err (!%p161_p13)
}
  0x22   :  { %s165_s19 = scalar_lea.vmem %s40_s28, 256  ;;  %p170_p1 = scmp.lt.s32.totalorder %s40_s28, %s40_s28 }
  0x23   :  { %p166_p0 = scmp.ne.s32.totalorder %s40_s28, %s165_s19  ;;  %p171_p2 = scmp.lt.s32.totalorder %s165_s19, %s165_s19 }
  0x25   :  { %p172_p3 = por %p171_p2, %p170_p1 }
  0x27   :  { %p173_p4 = pnand %p172_p3, %p166_p0 }
  0x29   :  { %176 = shalt.err (!%p173_p4)
}
  0x2a   :  { %42 = dma.hbm_to_vmem [thread:$0]  %s330_s2, 256, %s40_s28, [#allocation8]  }
  0x2b   :  { %221 = dma.done.wait [#allocation5], 16  }
  0x2c   :  { %222 = vsyncadd [#allocation5], 4294967280 }
  0x2d   :  { %223 = dma.done.wait [#allocation3], 256  }
  0x2e   :  { %224 = vsyncadd [#allocation3], 4294967040 }
  0x2f   :  { %225 = dma.done.wait [#allocation8], 256  }
  0x30   :  { %226 = vsyncadd [#allocation8], 4294967040 }
  0x31   :  { %52 = sfence }
  0x32   :  { %s53_s21 = sld [smem:[#allocation2]]  ;;  %s115_s22 = sld [smem:[#allocation2 + $0x2]]  ;;  %v58_v0 = vld [vmem:[#allocation6] sm:$0xff]  ;;  %v60_v1 = vld [vmem:[#allocation7] sm:$0xff]  ;;  %v59_v2 = vld [vmem:[#allocation6 + $0x8] sm:$0xff] }
  0x33   :  { %s117_s23 = sld [smem:[#allocation2 + $0x4]]  ;;  %s114_s24 = sld [smem:[#allocation2 + $0x1]]  ;;  %v61_v3 = vld [vmem:[#allocation7 + $0x8] sm:$0xff] }
  0x34   :  { %s116_s25 = sld [smem:[#allocation2 + $0x3]]  ;;  %s234_s2 = smov [#allocation10]  }
  0x35   :  { %s99_s26 = sshll.u32 %s234_s2, 4  ;;  %s235_s27 = smov [#allocation9]   ;;  %s100_s26 = int_to_ptr.vmem [resolvable:$true] %s99_s26 }
  0x36   :  { %s89_s28 = sshll.u32 %s235_s27, 4  ;;  %s177_s29 = scalar_lea.vmem %s100_s26, 256  ;;  %s297_s28 = int_to_ptr.vmem [resolvable:$true] %s89_s28 }
  0x37   :  { %p178_p5 = scmp.ne.s32.totalorder %s100_s26, %s177_s29  ;;  %p182_p6 = scmp.lt.s32.totalorder %s100_s26, %s100_s26 }
  0x38   :  { %v62_v4 = vstv %s53_s21  ;;  %v65_v5 = vstv %s115_s22  ;;  %p183_p7 = scmp.lt.s32.totalorder %s177_s29, %s177_s29 }
  0x39   :  { %v63_v6 = vmul.f32 %v62_v4, %v58_v0  ;;  %v66_v7 = vmul.f32 %v65_v5, %v60_v1  ;;  %v64_v8 = vmul.f32 %v62_v4, %v59_v2  ;;  %v70_v9 = vstv %s117_s23 }
  0x3a   :  { %v67_v10 = vmul.f32 %v65_v5, %v61_v3  ;;  %v75_v11 = vstv %s114_s24  ;;  %v78_v12 = vstv %s116_s25  ;;  %p184_p8 = por %p183_p7, %p182_p6 }
  0x3b   :  { %v68_v13 = vadd.f32 %v66_v7, %v63_v6  ;;  %v76_v14 = vmul.f32 %v75_v11, %v60_v1  ;;  %v77_v15 = vmul.f32 %v75_v11, %v61_v3 }
  0x3c   :  { %v69_v16 = vadd.f32 %v67_v10, %v64_v8  ;;  %p185_p9 = pnand %p184_p8, %p178_p5 }
  0x3d   :  { %v71_v17 = vadd.f32 %v70_v9, %v68_v13  ;;  %v79_v18 = vadd.f32 %v78_v12, %v76_v14  ;;  %v80_v19 = vadd.f32 %v78_v12, %v77_v15 }
  0x3e   :  { %v72_v20 = vadd.f32 %v70_v9, %v69_v16 }
  0x3f   :  { %73 = vst [vmem:[#allocation9] sm:$0xff] %v71_v17  ;;  %81 = vst [vmem:[#allocation10] sm:$0xff] %v79_v18 }
  0x40   :  { %82 = vst [vmem:[#allocation10 + $0x8] sm:$0xff] %v80_v19  ;;  %74 = vst [vmem:[#allocation9 + $0x8] sm:$0xff] %v72_v20 }
  0x41   :  { %188 = shalt.err (!%p185_p9)
}
  0x42   :  { %s189_s6 = scalar_lea.hbm %s332_s4, 256 }
  0x43   :  { %p190_p10 = scmp.ne.s32.totalorder %s332_s4, %s189_s6  ;;  %p193_p11 = scmp.lt.u32.totalorder %s189_s6, %s332_s4 }
  0x45   :  { %p195_p12 = pnand %p193_p11, %p190_p10 }
  0x47   :  { %198 = shalt.err (!%p195_p12)
}
  0x48   :  { %102 = dma.vmem_to_hbm [thread:$0]  %s100_s26, 256, %s332_s4, [#allocation11]  }
  0x49   :  { %s199_s12 = scalar_lea.vmem %s297_s28, 256  ;;  %p204_p0 = scmp.lt.s32.totalorder %s297_s28, %s297_s28 }
  0x4a   :  { %p200_p13 = scmp.ne.s32.totalorder %s297_s28, %s199_s12  ;;  %p205_p1 = scmp.lt.s32.totalorder %s199_s12, %s199_s12 }
  0x4c   :  { %p206_p2 = por %p205_p1, %p204_p0 }
  0x4e   :  { %p207_p3 = pnand %p206_p2, %p200_p13 }
  0x50   :  { %210 = shalt.err (!%p207_p3)
}
  0x51   :  { %s211_s15 = scalar_lea.hbm %s331_s3, 256 }
  0x52   :  { %p212_p4 = scmp.ne.s32.totalorder %s331_s3, %s211_s15  ;;  %p215_p5 = scmp.lt.u32.totalorder %s211_s15, %s331_s3 }
  0x54   :  { %p217_p6 = pnand %p215_p5, %p212_p4 }
  0x56   :  { %220 = shalt.err (!%p217_p6)
}
  0x57   :  { %92 = dma.vmem_to_hbm [thread:$0]  %s297_s28, 256, %s331_s3, [#allocation4]  }
  0x58   :  { %227 = dma.done.wait [#allocation4], 256  }
  0x59   :  { %228 = vsyncadd [#allocation4], 4294967040 }
  0x5a   :  { %229 = dma.done.wait [#allocation11], 256  }
  0x5b   :  { %230 = vsyncadd [#allocation11], 4294967040 }
  0x5c   :  { %109 = vsyncpa [#allocation3], 1 }
  0x5d   :  { %110 = vsyncpa [#allocation8], 1 }
  0x5e   :  { %111 = vsyncpa [#allocation4], 1 }
  0x5f   :  { %112 = vsyncpa [#allocation11], 1 }
  0x60   :  { %113 = vsyncpa [#allocation5], 1 }

</bundles_post_ra>
